<compile_context>
chip_gen: v6e
topology: v6e:2x2x1
jax: 0.10.0
libtpu: 0.0.40
codegen_flags: <defaults>
</compile_context>

<pallas_src>
import functools

import jax
import jax.numpy as jnp
from jax.experimental import pallas as pl
from jax.experimental.pallas import tpu as pltpu


# ----------------------------------------------------------------------------
# Pallas kernel: full 2-layer LSTM recurrence + final Linear, all in VMEM.
# ----------------------------------------------------------------------------
def lstm_kernel(x_ref,          # ((T+1)*Bp, D) bf16  time-major (+1 dummy step)
                wih0_big_ref,   # (D, 8H)  bf16  layer-0 input weights, big layout
                b_big_ref,      # (1, 8H)  f32   [b0 | b1] interleaved
                w_big_ref,      # (2H, 8H) bf16  fused recurrent weights
                wfc_ref,        # (H, D)   bf16
                bfc_ref,        # (1, D)   f32
                out_ref,        # (Bp, D)  f32
                *, T, Bp):
    H = w_big_ref.shape[0] // 2
    H2, H4, H6 = 2 * H, 4 * H, 6 * H

    # ---- hoisted off the recurrence: input projection for ALL timesteps ----
    # Column layout: [i0,i1 | f0,f1 | o0,o1 | g0,g1].  Layer-0 positions hold
    # x_t @ wih0 + b0; layer-1 positions hold just b1 (wih0_big is zero there),
    # so the per-step add below is one full-slab elementwise add.
    xproj = (jnp.dot(x_ref[...], wih0_big_ref[...],
                     preferred_element_type=jnp.float32)
             + b_big_ref[...])                           # ((T+1)*Bp, 8H) f32
    w_big = w_big_ref[...]                               # (2H, 8H) bf16

    def sig(v):
        # sigmoid(x) = 0.5*(tanh(x/2)+1): keeps the transcendental on the EUP.
        return 0.5 * jnp.tanh(0.5 * v) + 0.5

    # ---- priming: layer-0 cell at t = 0 (h_{-1} = c_{-1} = 0) --------------
    p = xproj[0:Bp]
    c0 = sig(p[:, 0:H]) * jnp.tanh(p[:, H6:H6 + H])      # i0 * g0   (f0*0 = 0)
    h0 = sig(p[:, H4:H4 + H]) * jnp.tanh(c0)             # o0 * tanh(c0)
    z = jnp.zeros((Bp, H), jnp.float32)
    h = jnp.concatenate([h0, z], axis=-1)                # [h0_t   | h1_{t-1}]
    c = jnp.concatenate([c0, z], axis=-1)                # [c0_t   | c1_{t-1}]

    # ---- wavefront recurrence: ONE fused MXU push per timestep -------------
    # Iteration t produces layer-0 gates for step t+1 and layer-1 gates for
    # step t; the joint state update yields h = [h0_{t+1} | h1_t], which is
    # exactly the next iteration's matmul LHS (no per-step concatenate).
    for t in range(T):                                   # T small & static
        g = jnp.dot(h.astype(jnp.bfloat16), w_big,
                    preferred_element_type=jnp.float32)  # (Bp, 8H)
        pre = g + xproj[(t + 1) * Bp:(t + 2) * Bp]       # sublane-aligned slab
        s = sig(pre[:, :H6])                             # [i0,i1,f0,f1,o0,o1]
        u = jnp.tanh(pre[:, H6:])                        # [g0,g1]
        c = s[:, H2:H4] * c + s[:, :H2] * u              # [c0_{t+1} | c1_t]
        h = s[:, H4:H6] * jnp.tanh(c)                    # [h0_{t+1} | h1_t]
    # After t = T-1 the layer-0 half (h0_T) is dead code; h[:, H:] = h1_{T-1}.

    # fc(lstm_out[:, -1, :]) == fc(h1 at the last real timestep)
    out_ref[...] = (jnp.dot(h[:, H:].astype(jnp.bfloat16), wfc_ref[...],
                            preferred_element_type=jnp.float32)
                    + bfc_ref[...])


# ----------------------------------------------------------------------------
# Wrapper: layout plumbing (gate interleave, fused weight stacking, batch
# padding, time-major flatten, bf16 casts) + pallas_call.
# ----------------------------------------------------------------------------
def _interleave(l0, l1, H):
    """From two (..., 4H) tensors in PyTorch gate order (i,f,g,o), build the
    (..., 8H) big layout [i0,i1 | f0,f1 | o0,o1 | g0,g1]."""
    i0, f0, g0, o0 = l0[..., 0:H], l0[..., H:2*H], l0[..., 2*H:3*H], l0[..., 3*H:]
    i1, f1, g1, o1 = l1[..., 0:H], l1[..., H:2*H], l1[..., 2*H:3*H], l1[..., 3*H:]
    return jnp.concatenate([i0, i1, f0, f1, o0, o1, g0, g1], axis=-1)


def lstm_model_pallas(x, params):
    """x: (B, T, D) float32, like the PyTorch module (batch_first=True)."""
    B, T, D = x.shape
    H = params["whh0"].shape[0]
    Bp = ((B + 7) // 8) * 8            # pad batch to a sublane multiple

    # Fused / interleaved weight layouts (see kernel header).
    wih0_big = _interleave(params["wih0"], jnp.zeros((D, 4 * H), jnp.float32), H)
    b_big = _interleave(params["b0"], params["b1"], H)                  # (1, 8H)
    w_big = jnp.concatenate(
        [_interleave(params["whh0"], params["wih1"], H),               # rows 0:H  (x h0_t)
         _interleave(jnp.zeros_like(params["whh1"]), params["whh1"], H)],  # rows H:2H (x h1_{t-1})
        axis=0)                                                        # (2H, 8H)

    # Time-major, batch padded to Bp, plus one dummy (zero) trailing timestep
    # so the wavefront loop's xproj[t+1] read is uniform for all t.
    x_tm = jnp.transpose(x, (1, 0, 2)).astype(jnp.float32)             # (T, B, D)
    x_tm = jnp.pad(x_tm, ((0, 1), (0, Bp - B), (0, 0)))                # (T+1, Bp, D)
    x_tm = x_tm.reshape((T + 1) * Bp, D)

    bf16 = jnp.bfloat16
    vmem = pl.BlockSpec(memory_space=pltpu.MemorySpace.VMEM)
    out = pl.pallas_call(
        functools.partial(lstm_kernel, T=T, Bp=Bp),
        out_shape=jax.ShapeDtypeStruct((Bp, D), jnp.float32),
        in_specs=[vmem] * 6,
        out_specs=vmem,
    )(x_tm.astype(bf16), wih0_big.astype(bf16), b_big,
      w_big.astype(bf16), params["wfc"].astype(bf16), params["bfc"])
    return out[:B]


# ----------------------------------------------------------------------------
# Deterministic parameter init (nn.LSTM / nn.Linear shapes, PyTorch gate
# order) and a pure-JAX f32 reference for verification.
# ----------------------------------------------------------------------------
def init_params(key, input_dim, hidden_dim):
    D, H = input_dim, hidden_dim
    k = 1.0 / jnp.sqrt(H)
    keys = jax.random.split(key, 10)

    def u(kk, shape):
        return jax.random.uniform(kk, shape, jnp.float32, -k, k)

    # PyTorch stores W_ih: (4H, D), W_hh: (4H, H), biases b_ih + b_hh: (4H,)
    w_ih0 = u(keys[0], (4 * H, D))
    w_hh0 = u(keys[1], (4 * H, H))
    b0 = u(keys[2], (4 * H,)) + u(keys[3], (4 * H,))
    w_ih1 = u(keys[4], (4 * H, H))
    w_hh1 = u(keys[5], (4 * H, H))
    b1 = u(keys[6], (4 * H,)) + u(keys[7], (4 * H,))
    w_fc = u(keys[8], (D, H))
    b_fc = u(keys[9], (D,))

    # Pre-transposed weights (row-major matmul layout), PyTorch gate order.
    return {
        "wih0": w_ih0.T, "whh0": w_hh0.T, "b0": b0[None, :],
        "wih1": w_ih1.T, "whh1": w_hh1.T, "b1": b1[None, :],
        "wfc": w_fc.T, "bfc": b_fc[None, :],
    }


def lstm_model_ref(x, params):
    """Pure-JAX reference mirroring PyTorch nn.LSTM(num_layers=2) + fc."""
    B, T, D = x.shape
    H = params["whh0"].shape[0]

    def cell(x_t, h, c, wih, whh, b):
        gates = x_t @ wih + h @ whh + b
        i = jax.nn.sigmoid(gates[:, 0 * H:1 * H])
        f = jax.nn.sigmoid(gates[:, 1 * H:2 * H])
        g = jnp.tanh(gates[:, 2 * H:3 * H])
        o = jax.nn.sigmoid(gates[:, 3 * H:4 * H])
        c = f * c + i * g
        h = o * jnp.tanh(c)
        return h, c

    h0 = c0 = h1 = c1 = jnp.zeros((B, H), jnp.float32)
    for t in range(T):
        h0, c0 = cell(x[:, t, :], h0, c0,
                      params["wih0"], params["whh0"], params["b0"])
        h1, c1 = cell(h0, h1, c1,
                      params["wih1"], params["whh1"], params["b1"])
    return h1 @ params["wfc"] + params["bfc"]


if __name__ == "__main__":
    B, T, D, H = 2, 8, 8, 32   # batch, seq, input_dim, hidden_dim (num_layers=2)

    key = jax.random.PRNGKey(0)
    k_x, k_p = jax.random.split(key)
    x = jax.random.uniform(k_x, (B, T, D), jnp.float32)   # "MinMax-scaled" data
    params = init_params(k_p, D, H)

    out = jax.block_until_ready(lstm_model_pallas(x, params))
    ref = lstm_model_ref(x, params)

    assert out.shape == (B, D)
    # bf16 MXU operands (f32 accumulation) -> tolerance loosened vs f32 ref.
    assert jnp.allclose(out, ref, atol=5e-2, rtol=5e-2), (out, ref)

    print("KERNEL_OK")
</pallas_src>

<mosaic_0001>
module attributes {stable_mosaic.version = 11 : i64} {
  func.func @lstm_kernel(%arg0: memref<72x8xbf16, #tpu.memory_space<vmem>>, %arg1: memref<8x256xbf16, #tpu.memory_space<vmem>>, %arg2: memref<1x256xf32, #tpu.memory_space<vmem>>, %arg3: memref<64x256xbf16, #tpu.memory_space<vmem>>, %arg4: memref<32x8xbf16, #tpu.memory_space<vmem>>, %arg5: memref<1x8xf32, #tpu.memory_space<vmem>>, %arg6: memref<8x8xf32, #tpu.memory_space<vmem>>) attributes {dimension_semantics = [], scalar_prefetch = 0 : i64, scratch_operands = 0 : i64, tpu.core_type = #tpu.core_type<tc>} {
    %c0 = arith.constant 0 : index
    %c0_0 = arith.constant 0 : index
    %0 = vector.load %arg0[%c0, %c0_0] : memref<72x8xbf16, #tpu.memory_space<vmem>>, vector<72x8xbf16>
    %c0_1 = arith.constant 0 : index
    %c0_2 = arith.constant 0 : index
    %1 = vector.load %arg1[%c0_1, %c0_2] : memref<8x256xbf16, #tpu.memory_space<vmem>>, vector<8x256xbf16>
    %cst = arith.constant dense<0.000000e+00> : vector<72x256xf32>
    %2 = tpu.matmul %0, %1, %cst {dimension_numbers = #tpu.dot_dimension_numbers<[1], [0], [0], [1], [0, 0, 1, 1], [], []>} : vector<72x8xbf16>, vector<8x256xbf16>, vector<72x256xf32> -> vector<72x256xf32>
    %c0_3 = arith.constant 0 : index
    %c0_4 = arith.constant 0 : index
    %3 = vector.load %arg2[%c0_3, %c0_4] : memref<1x256xf32, #tpu.memory_space<vmem>>, vector<1x256xf32>
    %4 = vector.broadcast %3 : vector<1x256xf32> to vector<72x256xf32>
    %5 = arith.addf %2, %4 : vector<72x256xf32>
    %c0_5 = arith.constant 0 : index
    %c0_6 = arith.constant 0 : index
    %6 = vector.load %arg3[%c0_5, %c0_6] : memref<64x256xbf16, #tpu.memory_space<vmem>>, vector<64x256xbf16>
    %7 = vector.extract_strided_slice %5 {offsets = [0, 0], sizes = [8, 256], strides = [1, 1]} : vector<72x256xf32> to vector<8x256xf32>
    %8 = vector.extract_strided_slice %7 {offsets = [0, 0], sizes = [8, 32], strides = [1, 1]} : vector<8x256xf32> to vector<8x32xf32>
    %cst_7 = arith.constant 5.000000e-01 : f32
    %9 = vector.broadcast %cst_7 : f32 to vector<8x32xf32>
    %10 = arith.mulf %9, %8 : vector<8x32xf32>
    %11 = math.tanh %10 : vector<8x32xf32>
    %cst_8 = arith.constant 5.000000e-01 : f32
    %12 = vector.broadcast %cst_8 : f32 to vector<8x32xf32>
    %13 = arith.mulf %12, %11 : vector<8x32xf32>
    %cst_9 = arith.constant 5.000000e-01 : f32
    %14 = vector.broadcast %cst_9 : f32 to vector<8x32xf32>
    %15 = arith.addf %13, %14 : vector<8x32xf32>
    %16 = vector.extract_strided_slice %7 {offsets = [0, 192], sizes = [8, 32], strides = [1, 1]} : vector<8x256xf32> to vector<8x32xf32>
    %17 = math.tanh %16 : vector<8x32xf32>
    %18 = arith.mulf %15, %17 : vector<8x32xf32>
    %19 = vector.extract_strided_slice %7 {offsets = [0, 128], sizes = [8, 32], strides = [1, 1]} : vector<8x256xf32> to vector<8x32xf32>
    %cst_10 = arith.constant 5.000000e-01 : f32
    %20 = vector.broadcast %cst_10 : f32 to vector<8x32xf32>
    %21 = arith.mulf %20, %19 : vector<8x32xf32>
    %22 = math.tanh %21 : vector<8x32xf32>
    %cst_11 = arith.constant 5.000000e-01 : f32
    %23 = vector.broadcast %cst_11 : f32 to vector<8x32xf32>
    %24 = arith.mulf %23, %22 : vector<8x32xf32>
    %cst_12 = arith.constant 5.000000e-01 : f32
    %25 = vector.broadcast %cst_12 : f32 to vector<8x32xf32>
    %26 = arith.addf %24, %25 : vector<8x32xf32>
    %27 = math.tanh %18 : vector<8x32xf32>
    %28 = arith.mulf %26, %27 : vector<8x32xf32>
    %cst_13 = arith.constant 0.000000e+00 : f32
    %29 = vector.broadcast %cst_13 : f32 to vector<8x32xf32>
    %30 = tpu.concatenate %28, %29 in 1 : vector<8x32xf32>, vector<8x32xf32> -> vector<8x64xf32>
    %31 = tpu.concatenate %18, %29 in 1 : vector<8x32xf32>, vector<8x32xf32> -> vector<8x64xf32>
    %32 = arith.truncf %30 : vector<8x64xf32> to vector<8x64xbf16>
    %cst_14 = arith.constant dense<0.000000e+00> : vector<8x256xf32>
    %33 = tpu.matmul %32, %6, %cst_14 {dimension_numbers = #tpu.dot_dimension_numbers<[1], [0], [0], [1], [0, 0, 1, 1], [], []>} : vector<8x64xbf16>, vector<64x256xbf16>, vector<8x256xf32> -> vector<8x256xf32>
    %34 = vector.extract_strided_slice %5 {offsets = [8, 0], sizes = [8, 256], strides = [1, 1]} : vector<72x256xf32> to vector<8x256xf32>
    %35 = arith.addf %33, %34 : vector<8x256xf32>
    %36 = vector.extract_strided_slice %35 {offsets = [0, 0], sizes = [8, 192], strides = [1, 1]} : vector<8x256xf32> to vector<8x192xf32>
    %cst_15 = arith.constant 5.000000e-01 : f32
    %37 = vector.broadcast %cst_15 : f32 to vector<8x192xf32>
    %38 = arith.mulf %37, %36 : vector<8x192xf32>
    %39 = math.tanh %38 : vector<8x192xf32>
    %cst_16 = arith.constant 5.000000e-01 : f32
    %40 = vector.broadcast %cst_16 : f32 to vector<8x192xf32>
    %41 = arith.mulf %40, %39 : vector<8x192xf32>
    %cst_17 = arith.constant 5.000000e-01 : f32
    %42 = vector.broadcast %cst_17 : f32 to vector<8x192xf32>
    %43 = arith.addf %41, %42 : vector<8x192xf32>
    %44 = vector.extract_strided_slice %35 {offsets = [0, 192], sizes = [8, 64], strides = [1, 1]} : vector<8x256xf32> to vector<8x64xf32>
    %45 = math.tanh %44 : vector<8x64xf32>
    %46 = vector.extract_strided_slice %43 {offsets = [0, 64], sizes = [8, 64], strides = [1, 1]} : vector<8x192xf32> to vector<8x64xf32>
    %47 = arith.mulf %46, %31 : vector<8x64xf32>
    %48 = vector.extract_strided_slice %43 {offsets = [0, 0], sizes = [8, 64], strides = [1, 1]} : vector<8x192xf32> to vector<8x64xf32>
    %49 = arith.mulf %48, %45 : vector<8x64xf32>
    %50 = arith.addf %47, %49 : vector<8x64xf32>
    %51 = vector.extract_strided_slice %43 {offsets = [0, 128], sizes = [8, 64], strides = [1, 1]} : vector<8x192xf32> to vector<8x64xf32>
    %52 = math.tanh %50 : vector<8x64xf32>
    %53 = arith.mulf %51, %52 : vector<8x64xf32>
    %54 = arith.truncf %53 : vector<8x64xf32> to vector<8x64xbf16>
    %cst_18 = arith.constant dense<0.000000e+00> : vector<8x256xf32>
    %55 = tpu.matmul %54, %6, %cst_18 {dimension_numbers = #tpu.dot_dimension_numbers<[1], [0], [0], [1], [0, 0, 1, 1], [], []>} : vector<8x64xbf16>, vector<64x256xbf16>, vector<8x256xf32> -> vector<8x256xf32>
    %56 = vector.extract_strided_slice %5 {offsets = [16, 0], sizes = [8, 256], strides = [1, 1]} : vector<72x256xf32> to vector<8x256xf32>
    %57 = arith.addf %55, %56 : vector<8x256xf32>
    %58 = vector.extract_strided_slice %57 {offsets = [0, 0], sizes = [8, 192], strides = [1, 1]} : vector<8x256xf32> to vector<8x192xf32>
    %cst_19 = arith.constant 5.000000e-01 : f32
    %59 = vector.broadcast %cst_19 : f32 to vector<8x192xf32>
    %60 = arith.mulf %59, %58 : vector<8x192xf32>
    %61 = math.tanh %60 : vector<8x192xf32>
    %cst_20 = arith.constant 5.000000e-01 : f32
    %62 = vector.broadcast %cst_20 : f32 to vector<8x192xf32>
    %63 = arith.mulf %62, %61 : vector<8x192xf32>
    %cst_21 = arith.constant 5.000000e-01 : f32
    %64 = vector.broadcast %cst_21 : f32 to vector<8x192xf32>
    %65 = arith.addf %63, %64 : vector<8x192xf32>
    %66 = vector.extract_strided_slice %57 {offsets = [0, 192], sizes = [8, 64], strides = [1, 1]} : vector<8x256xf32> to vector<8x64xf32>
    %67 = math.tanh %66 : vector<8x64xf32>
    %68 = vector.extract_strided_slice %65 {offsets = [0, 64], sizes = [8, 64], strides = [1, 1]} : vector<8x192xf32> to vector<8x64xf32>
    %69 = arith.mulf %68, %50 : vector<8x64xf32>
    %70 = vector.extract_strided_slice %65 {offsets = [0, 0], sizes = [8, 64], strides = [1, 1]} : vector<8x192xf32> to vector<8x64xf32>
    %71 = arith.mulf %70, %67 : vector<8x64xf32>
    %72 = arith.addf %69, %71 : vector<8x64xf32>
    %73 = vector.extract_strided_slice %65 {offsets = [0, 128], sizes = [8, 64], strides = [1, 1]} : vector<8x192xf32> to vector<8x64xf32>
    %74 = math.tanh %72 : vector<8x64xf32>
    %75 = arith.mulf %73, %74 : vector<8x64xf32>
    %76 = arith.truncf %75 : vector<8x64xf32> to vector<8x64xbf16>
    %cst_22 = arith.constant dense<0.000000e+00> : vector<8x256xf32>
    %77 = tpu.matmul %76, %6, %cst_22 {dimension_numbers = #tpu.dot_dimension_numbers<[1], [0], [0], [1], [0, 0, 1, 1], [], []>} : vector<8x64xbf16>, vector<64x256xbf16>, vector<8x256xf32> -> vector<8x256xf32>
    %78 = vector.extract_strided_slice %5 {offsets = [24, 0], sizes = [8, 256], strides = [1, 1]} : vector<72x256xf32> to vector<8x256xf32>
    %79 = arith.addf %77, %78 : vector<8x256xf32>
    %80 = vector.extract_strided_slice %79 {offsets = [0, 0], sizes = [8, 192], strides = [1, 1]} : vector<8x256xf32> to vector<8x192xf32>
    %cst_23 = arith.constant 5.000000e-01 : f32
    %81 = vector.broadcast %cst_23 : f32 to vector<8x192xf32>
    %82 = arith.mulf %81, %80 : vector<8x192xf32>
    %83 = math.tanh %82 : vector<8x192xf32>
    %cst_24 = arith.constant 5.000000e-01 : f32
    %84 = vector.broadcast %cst_24 : f32 to vector<8x192xf32>
    %85 = arith.mulf %84, %83 : vector<8x192xf32>
    %cst_25 = arith.constant 5.000000e-01 : f32
    %86 = vector.broadcast %cst_25 : f32 to vector<8x192xf32>
    %87 = arith.addf %85, %86 : vector<8x192xf32>
    %88 = vector.extract_strided_slice %79 {offsets = [0, 192], sizes = [8, 64], strides = [1, 1]} : vector<8x256xf32> to vector<8x64xf32>
    %89 = math.tanh %88 : vector<8x64xf32>
    %90 = vector.extract_strided_slice %87 {offsets = [0, 64], sizes = [8, 64], strides = [1, 1]} : vector<8x192xf32> to vector<8x64xf32>
    %91 = arith.mulf %90, %72 : vector<8x64xf32>
    %92 = vector.extract_strided_slice %87 {offsets = [0, 0], sizes = [8, 64], strides = [1, 1]} : vector<8x192xf32> to vector<8x64xf32>
    %93 = arith.mulf %92, %89 : vector<8x64xf32>
    %94 = arith.addf %91, %93 : vector<8x64xf32>
    %95 = vector.extract_strided_slice %87 {offsets = [0, 128], sizes = [8, 64], strides = [1, 1]} : vector<8x192xf32> to vector<8x64xf32>
    %96 = math.tanh %94 : vector<8x64xf32>
    %97 = arith.mulf %95, %96 : vector<8x64xf32>
    %98 = arith.truncf %97 : vector<8x64xf32> to vector<8x64xbf16>
    %cst_26 = arith.constant dense<0.000000e+00> : vector<8x256xf32>
    %99 = tpu.matmul %98, %6, %cst_26 {dimension_numbers = #tpu.dot_dimension_numbers<[1], [0], [0], [1], [0, 0, 1, 1], [], []>} : vector<8x64xbf16>, vector<64x256xbf16>, vector<8x256xf32> -> vector<8x256xf32>
    %100 = vector.extract_strided_slice %5 {offsets = [32, 0], sizes = [8, 256], strides = [1, 1]} : vector<72x256xf32> to vector<8x256xf32>
    %101 = arith.addf %99, %100 : vector<8x256xf32>
    %102 = vector.extract_strided_slice %101 {offsets = [0, 0], sizes = [8, 192], strides = [1, 1]} : vector<8x256xf32> to vector<8x192xf32>
    %cst_27 = arith.constant 5.000000e-01 : f32
    %103 = vector.broadcast %cst_27 : f32 to vector<8x192xf32>
    %104 = arith.mulf %103, %102 : vector<8x192xf32>
    %105 = math.tanh %104 : vector<8x192xf32>
    %cst_28 = arith.constant 5.000000e-01 : f32
    %106 = vector.broadcast %cst_28 : f32 to vector<8x192xf32>
    %107 = arith.mulf %106, %105 : vector<8x192xf32>
    %cst_29 = arith.constant 5.000000e-01 : f32
    %108 = vector.broadcast %cst_29 : f32 to vector<8x192xf32>
    %109 = arith.addf %107, %108 : vector<8x192xf32>
    %110 = vector.extract_strided_slice %101 {offsets = [0, 192], sizes = [8, 64], strides = [1, 1]} : vector<8x256xf32> to vector<8x64xf32>
    %111 = math.tanh %110 : vector<8x64xf32>
    %112 = vector.extract_strided_slice %109 {offsets = [0, 64], sizes = [8, 64], strides = [1, 1]} : vector<8x192xf32> to vector<8x64xf32>
    %113 = arith.mulf %112, %94 : vector<8x64xf32>
    %114 = vector.extract_strided_slice %109 {offsets = [0, 0], sizes = [8, 64], strides = [1, 1]} : vector<8x192xf32> to vector<8x64xf32>
    %115 = arith.mulf %114, %111 : vector<8x64xf32>
    %116 = arith.addf %113, %115 : vector<8x64xf32>
    %117 = vector.extract_strided_slice %109 {offsets = [0, 128], sizes = [8, 64], strides = [1, 1]} : vector<8x192xf32> to vector<8x64xf32>
    %118 = math.tanh %116 : vector<8x64xf32>
    %119 = arith.mulf %117, %118 : vector<8x64xf32>
    %120 = arith.truncf %119 : vector<8x64xf32> to vector<8x64xbf16>
    %cst_30 = arith.constant dense<0.000000e+00> : vector<8x256xf32>
    %121 = tpu.matmul %120, %6, %cst_30 {dimension_numbers = #tpu.dot_dimension_numbers<[1], [0], [0], [1], [0, 0, 1, 1], [], []>} : vector<8x64xbf16>, vector<64x256xbf16>, vector<8x256xf32> -> vector<8x256xf32>
    %122 = vector.extract_strided_slice %5 {offsets = [40, 0], sizes = [8, 256], strides = [1, 1]} : vector<72x256xf32> to vector<8x256xf32>
    %123 = arith.addf %121, %122 : vector<8x256xf32>
    %124 = vector.extract_strided_slice %123 {offsets = [0, 0], sizes = [8, 192], strides = [1, 1]} : vector<8x256xf32> to vector<8x192xf32>
    %cst_31 = arith.constant 5.000000e-01 : f32
    %125 = vector.broadcast %cst_31 : f32 to vector<8x192xf32>
    %126 = arith.mulf %125, %124 : vector<8x192xf32>
    %127 = math.tanh %126 : vector<8x192xf32>
    %cst_32 = arith.constant 5.000000e-01 : f32
    %128 = vector.broadcast %cst_32 : f32 to vector<8x192xf32>
    %129 = arith.mulf %128, %127 : vector<8x192xf32>
    %cst_33 = arith.constant 5.000000e-01 : f32
    %130 = vector.broadcast %cst_33 : f32 to vector<8x192xf32>
    %131 = arith.addf %129, %130 : vector<8x192xf32>
    %132 = vector.extract_strided_slice %123 {offsets = [0, 192], sizes = [8, 64], strides = [1, 1]} : vector<8x256xf32> to vector<8x64xf32>
    %133 = math.tanh %132 : vector<8x64xf32>
    %134 = vector.extract_strided_slice %131 {offsets = [0, 64], sizes = [8, 64], strides = [1, 1]} : vector<8x192xf32> to vector<8x64xf32>
    %135 = arith.mulf %134, %116 : vector<8x64xf32>
    %136 = vector.extract_strided_slice %131 {offsets = [0, 0], sizes = [8, 64], strides = [1, 1]} : vector<8x192xf32> to vector<8x64xf32>
    %137 = arith.mulf %136, %133 : vector<8x64xf32>
    %138 = arith.addf %135, %137 : vector<8x64xf32>
    %139 = vector.extract_strided_slice %131 {offsets = [0, 128], sizes = [8, 64], strides = [1, 1]} : vector<8x192xf32> to vector<8x64xf32>
    %140 = math.tanh %138 : vector<8x64xf32>
    %141 = arith.mulf %139, %140 : vector<8x64xf32>
    %142 = arith.truncf %141 : vector<8x64xf32> to vector<8x64xbf16>
    %cst_34 = arith.constant dense<0.000000e+00> : vector<8x256xf32>
    %143 = tpu.matmul %142, %6, %cst_34 {dimension_numbers = #tpu.dot_dimension_numbers<[1], [0], [0], [1], [0, 0, 1, 1], [], []>} : vector<8x64xbf16>, vector<64x256xbf16>, vector<8x256xf32> -> vector<8x256xf32>
    %144 = vector.extract_strided_slice %5 {offsets = [48, 0], sizes = [8, 256], strides = [1, 1]} : vector<72x256xf32> to vector<8x256xf32>
    %145 = arith.addf %143, %144 : vector<8x256xf32>
    %146 = vector.extract_strided_slice %145 {offsets = [0, 0], sizes = [8, 192], strides = [1, 1]} : vector<8x256xf32> to vector<8x192xf32>
    %cst_35 = arith.constant 5.000000e-01 : f32
    %147 = vector.broadcast %cst_35 : f32 to vector<8x192xf32>
    %148 = arith.mulf %147, %146 : vector<8x192xf32>
    %149 = math.tanh %148 : vector<8x192xf32>
    %cst_36 = arith.constant 5.000000e-01 : f32
    %150 = vector.broadcast %cst_36 : f32 to vector<8x192xf32>
    %151 = arith.mulf %150, %149 : vector<8x192xf32>
    %cst_37 = arith.constant 5.000000e-01 : f32
    %152 = vector.broadcast %cst_37 : f32 to vector<8x192xf32>
    %153 = arith.addf %151, %152 : vector<8x192xf32>
    %154 = vector.extract_strided_slice %145 {offsets = [0, 192], sizes = [8, 64], strides = [1, 1]} : vector<8x256xf32> to vector<8x64xf32>
    %155 = math.tanh %154 : vector<8x64xf32>
    %156 = vector.extract_strided_slice %153 {offsets = [0, 64], sizes = [8, 64], strides = [1, 1]} : vector<8x192xf32> to vector<8x64xf32>
    %157 = arith.mulf %156, %138 : vector<8x64xf32>
    %158 = vector.extract_strided_slice %153 {offsets = [0, 0], sizes = [8, 64], strides = [1, 1]} : vector<8x192xf32> to vector<8x64xf32>
    %159 = arith.mulf %158, %155 : vector<8x64xf32>
    %160 = arith.addf %157, %159 : vector<8x64xf32>
    %161 = vector.extract_strided_slice %153 {offsets = [0, 128], sizes = [8, 64], strides = [1, 1]} : vector<8x192xf32> to vector<8x64xf32>
    %162 = math.tanh %160 : vector<8x64xf32>
    %163 = arith.mulf %161, %162 : vector<8x64xf32>
    %164 = arith.truncf %163 : vector<8x64xf32> to vector<8x64xbf16>
    %cst_38 = arith.constant dense<0.000000e+00> : vector<8x256xf32>
    %165 = tpu.matmul %164, %6, %cst_38 {dimension_numbers = #tpu.dot_dimension_numbers<[1], [0], [0], [1], [0, 0, 1, 1], [], []>} : vector<8x64xbf16>, vector<64x256xbf16>, vector<8x256xf32> -> vector<8x256xf32>
    %166 = vector.extract_strided_slice %5 {offsets = [56, 0], sizes = [8, 256], strides = [1, 1]} : vector<72x256xf32> to vector<8x256xf32>
    %167 = arith.addf %165, %166 : vector<8x256xf32>
    %168 = vector.extract_strided_slice %167 {offsets = [0, 0], sizes = [8, 192], strides = [1, 1]} : vector<8x256xf32> to vector<8x192xf32>
    %cst_39 = arith.constant 5.000000e-01 : f32
    %169 = vector.broadcast %cst_39 : f32 to vector<8x192xf32>
    %170 = arith.mulf %169, %168 : vector<8x192xf32>
    %171 = math.tanh %170 : vector<8x192xf32>
    %cst_40 = arith.constant 5.000000e-01 : f32
    %172 = vector.broadcast %cst_40 : f32 to vector<8x192xf32>
    %173 = arith.mulf %172, %171 : vector<8x192xf32>
    %cst_41 = arith.constant 5.000000e-01 : f32
    %174 = vector.broadcast %cst_41 : f32 to vector<8x192xf32>
    %175 = arith.addf %173, %174 : vector<8x192xf32>
    %176 = vector.extract_strided_slice %167 {offsets = [0, 192], sizes = [8, 64], strides = [1, 1]} : vector<8x256xf32> to vector<8x64xf32>
    %177 = math.tanh %176 : vector<8x64xf32>
    %178 = vector.extract_strided_slice %175 {offsets = [0, 64], sizes = [8, 64], strides = [1, 1]} : vector<8x192xf32> to vector<8x64xf32>
    %179 = arith.mulf %178, %160 : vector<8x64xf32>
    %180 = vector.extract_strided_slice %175 {offsets = [0, 0], sizes = [8, 64], strides = [1, 1]} : vector<8x192xf32> to vector<8x64xf32>
    %181 = arith.mulf %180, %177 : vector<8x64xf32>
    %182 = arith.addf %179, %181 : vector<8x64xf32>
    %183 = vector.extract_strided_slice %175 {offsets = [0, 128], sizes = [8, 64], strides = [1, 1]} : vector<8x192xf32> to vector<8x64xf32>
    %184 = math.tanh %182 : vector<8x64xf32>
    %185 = arith.mulf %183, %184 : vector<8x64xf32>
    %186 = arith.truncf %185 : vector<8x64xf32> to vector<8x64xbf16>
    %cst_42 = arith.constant dense<0.000000e+00> : vector<8x256xf32>
    %187 = tpu.matmul %186, %6, %cst_42 {dimension_numbers = #tpu.dot_dimension_numbers<[1], [0], [0], [1], [0, 0, 1, 1], [], []>} : vector<8x64xbf16>, vector<64x256xbf16>, vector<8x256xf32> -> vector<8x256xf32>
    %188 = vector.extract_strided_slice %5 {offsets = [64, 0], sizes = [8, 256], strides = [1, 1]} : vector<72x256xf32> to vector<8x256xf32>
    %189 = arith.addf %187, %188 : vector<8x256xf32>
    %190 = vector.extract_strided_slice %189 {offsets = [0, 0], sizes = [8, 192], strides = [1, 1]} : vector<8x256xf32> to vector<8x192xf32>
    %cst_43 = arith.constant 5.000000e-01 : f32
    %191 = vector.broadcast %cst_43 : f32 to vector<8x192xf32>
    %192 = arith.mulf %191, %190 : vector<8x192xf32>
    %193 = math.tanh %192 : vector<8x192xf32>
    %cst_44 = arith.constant 5.000000e-01 : f32
    %194 = vector.broadcast %cst_44 : f32 to vector<8x192xf32>
    %195 = arith.mulf %194, %193 : vector<8x192xf32>
    %cst_45 = arith.constant 5.000000e-01 : f32
    %196 = vector.broadcast %cst_45 : f32 to vector<8x192xf32>
    %197 = arith.addf %195, %196 : vector<8x192xf32>
    %198 = vector.extract_strided_slice %189 {offsets = [0, 192], sizes = [8, 64], strides = [1, 1]} : vector<8x256xf32> to vector<8x64xf32>
    %199 = math.tanh %198 : vector<8x64xf32>
    %200 = vector.extract_strided_slice %197 {offsets = [0, 64], sizes = [8, 64], strides = [1, 1]} : vector<8x192xf32> to vector<8x64xf32>
    %201 = arith.mulf %200, %182 : vector<8x64xf32>
    %202 = vector.extract_strided_slice %197 {offsets = [0, 0], sizes = [8, 64], strides = [1, 1]} : vector<8x192xf32> to vector<8x64xf32>
    %203 = arith.mulf %202, %199 : vector<8x64xf32>
    %204 = arith.addf %201, %203 : vector<8x64xf32>
    %205 = vector.extract_strided_slice %197 {offsets = [0, 128], sizes = [8, 64], strides = [1, 1]} : vector<8x192xf32> to vector<8x64xf32>
    %206 = math.tanh %204 : vector<8x64xf32>
    %207 = arith.mulf %205, %206 : vector<8x64xf32>
    %208 = vector.extract_strided_slice %207 {offsets = [0, 32], sizes = [8, 32], strides = [1, 1]} : vector<8x64xf32> to vector<8x32xf32>
    %209 = arith.truncf %208 : vector<8x32xf32> to vector<8x32xbf16>
    %c0_46 = arith.constant 0 : index
    %c0_47 = arith.constant 0 : index
    %210 = vector.load %arg4[%c0_46, %c0_47] : memref<32x8xbf16, #tpu.memory_space<vmem>>, vector<32x8xbf16>
    %cst_48 = arith.constant dense<0.000000e+00> : vector<8x8xf32>
    %211 = tpu.matmul %209, %210, %cst_48 {dimension_numbers = #tpu.dot_dimension_numbers<[1], [0], [0], [1], [0, 0, 1, 1], [], []>} : vector<8x32xbf16>, vector<32x8xbf16>, vector<8x8xf32> -> vector<8x8xf32>
    %c0_49 = arith.constant 0 : index
    %c0_50 = arith.constant 0 : index
    %212 = vector.load %arg5[%c0_49, %c0_50] : memref<1x8xf32, #tpu.memory_space<vmem>>, vector<1x8xf32>
    %213 = vector.broadcast %212 : vector<1x8xf32> to vector<8x8xf32>
    %214 = arith.addf %211, %213 : vector<8x8xf32>
    %c0_51 = arith.constant 0 : index
    %c0_52 = arith.constant 0 : index
    %215 = vector.load %arg6[%c0_51, %c0_52] : memref<8x8xf32, #tpu.memory_space<vmem>>, vector<8x8xf32>
    tpu.vector_store %arg6[%c0_51, %c0_52], %214 {strides = array<i32>} : memref<8x8xf32, #tpu.memory_space<vmem>>, vector<8x8xf32>,
    return
  }
}

</mosaic_0001>

<bundles_post_ra>
// kernel: tpu_custom_call.1
= control target key start
LH: loop header
LB: loop body
LE: loop exit
PB: predicated region body
PF: predicated region fallthrough
CT: control target
= control target key end

     0   :  { %11 = vsyncpa [#allocation3], 0  ;;  %s1429_s0 = inlined_call_operand.vmem [shape: bf16[72,8], index: 0, kind: input, shape index: {}]   ;;  %s1430_s1 = inlined_call_operand.hbm [shape: bf16[8,256], index: 1, kind: input, shape index: {}]   ;;  %s1431_s2 = inlined_call_operand.hbm [shape: f32[1,256], index: 2, kind: input, shape index: {}]   ;;  %s1432_s3 = inlined_call_operand.vmem [shape: bf16[64,256], index: 3, kind: input, shape index: {}]   ;;  %s1433_s4 = inlined_call_operand.vmem [shape: bf16[32,8], index: 4, kind: input, shape index: {}]   ;;  %s1434_s5 = inlined_call_operand.vmem [shape: f32[1,8], index: 5, kind: input, shape index: {}]   ;;  %s1435_s6 = inlined_call_operand.hbm [shape: f32[8,8], index: 6, kind: output, shape index: {}]  }
   0x1   :  { %12 = vsyncpa [#allocation6], 0 }
   0x2   :  { %13 = vsyncpa [#allocation4], 0  ;;  %s1141_s21 = smov [#allocation2]   ;;  %s1142_s23 = smov [#allocation5]  }
   0x3   :  { %s22_s22 = sshll.u32 %s1141_s21, 4  ;;  %s32_s24 = sshll.u32 %s1142_s23, 4  ;;  %s23_s22 = int_to_ptr.vmem [resolvable:$true] %s22_s22  ;;  %s33_s24 = int_to_ptr.vmem [resolvable:$true] %s32_s24 }
   0x4   :  { %s1083_s25 = scalar_lea.vmem %s23_s22, 128  ;;  %p1088_p1 = scmp.lt.s32.totalorder %s23_s22, %s23_s22 }
   0x5   :  { %p1084_p0 = scmp.ne.s32.totalorder %s23_s22, %s1083_s25  ;;  %p1089_p2 = scmp.lt.s32.totalorder %s1083_s25, %s1083_s25 }
   0x7   :  { %p1090_p3 = por %p1089_p2, %p1088_p1 }
   0x9   :  { %p1091_p4 = pnand %p1090_p3, %p1084_p0 }
   0xb   :  { %1094 = shalt.err (!%p1091_p4)
}
   0xc   :  { %25 = dma.hbm_to_vmem [thread:$0]  %s1430_s1, 128, %s23_s22, [#allocation3]  }
   0xd   :  { %s1103_s28 = scalar_lea.vmem %s33_s24, 32  ;;  %p1108_p6 = scmp.lt.s32.totalorder %s33_s24, %s33_s24 }
   0xe   :  { %p1104_p5 = scmp.ne.s32.totalorder %s33_s24, %s1103_s28  ;;  %p1109_p7 = scmp.lt.s32.totalorder %s1103_s28, %s1103_s28 }
  0x10   :  { %p1110_p8 = por %p1109_p7, %p1108_p6 }
  0x12   :  { %p1111_p9 = pnand %p1110_p8, %p1104_p5 }
  0x14   :  { %1114 = shalt.err (!%p1111_p9)
}
  0x15   :  { %35 = dma.hbm_to_vmem [thread:$0]  %s1431_s2, 32, %s33_s24, [#allocation6]  }
  0x16   :  { %1135 = dma.done.wait [#allocation3], 128  }
  0x17   :  { %1136 = vsyncadd [#allocation3], 4294967168 }
  0x18   :  { %1137 = dma.done.wait [#allocation6], 32  }
  0x19   :  { %1138 = vsyncadd [#allocation6], 4294967264  ;;  %v1143_v0 = vmov 0   ;;  %v58_v1 = vld [vmem:[#allocation2] sm:$0xff]  ;;  %vm115_vm0 = vcmask 1043456   ;;  %vm99_vm1 = vcmask 64512   ;;  %v61_v6 = vlaneseq }
  0x1a   :  { %154 = vmatprep.mubr.bf16.mxu0 %v1143_v0  ;;  %307 = vmatprep.mubr.bf16.mxu1 %v1143_v0  ;;  %v936_v2 = vcombine.high %v58_v1, %v58_v1  ;;  %v935_v3 = vcombine.low %v58_v1, %v58_v1  ;;  %v984_v4 = vld [vmem:[%s1429_s0] sm:$0xff]   ;;  %v59_v9 = vld [vmem:[#allocation5] sm:$0x3]  ;;  %v1203_v14 = vld [vmem:[%s1432_s3 + $0x34] ss:$8 sps:$4 sm:$0xff]   ;;  %s1144_s19 = smov 64  }
  0x1b   :  { %v62_v7 = vshrl.u32 %v61_v6, 7  ;;  %v1208_v15 = vld [vmem:[%s1432_s3 + $0x30] ss:$8 sps:$4 sm:$0xff]   ;;  %283 = vmatprep.subr.bf16.mxu1 %v1203_v14  ;;  %v1217_v16 = vld [vmem:[%s1432_s3 + $0x24] ss:$8 sps:$4 sm:$0xff]   ;;  %vm227_vm2 = vcmask 261120  }
  0x1c   :  { %937 = vmatprep.subr.msk.bf16.mxu0 %vm115_vm0, %v936_v2  ;;  %v117_v5 = vsel %vm115_vm0, %v935_v3, 0  ;;  %284 = vmatpush1.bf16.msra.mxu1 %v1208_v15  ;;  %v1222_v17 = vld [vmem:[%s1432_s3 + $0x20] ss:$8 sps:$4 sm:$0xff]   ;;  %v1231_v18 = vld [vmem:[%s1432_s3 + $0x14] ss:$8 sps:$4 sm:$0xff]   ;;  %vm271_vm3 = vcmask 523264  }
  0x1d   :  { %137 = vmatpush1.bf16.msra.mxu0 %v117_v5  ;;  %v67_v8 = vsub.s32 1, %v62_v7  ;;  %285 = vmatprep.subr.bf16.mxu1 %v1217_v16  ;;  %v1236_v20 = vld [vmem:[%s1432_s3 + $0x10] ss:$8 sps:$4 sm:$0xff]   ;;  %v1245_v21 = vld [vmem:[%s1432_s3 + $0x4] ss:$8 sps:$4 sm:$0xff]   ;;  %v63_v23 = vsub.s32 0, %v62_v7 }
  0x1e   :  { %429 = vmatprep.subr.bf16.mxu0 %v1203_v14  ;;  %v1251_v22 = vld [vmem:[%s1432_s3] ss:$8 sps:$4 sm:$0xff]   ;;  %vm1146_vm4 = vmmov 0   ;;  %s1147_s8 = smov 96   ;;  %s1148_s10 = smov [#allocation7]  }
  0x1f   :  { %v1197_v10 = vrot.slane %v59_v9, %v67_v8  ;;  %v1259_v24 = vrot.slane %v59_v9, %v63_v23  ;;  %v997_v58 = vld [vmem:[%s1429_s0 + $0x8] sm:$0xff]   ;;  %s920_s11 = sshll.u32 %s1148_s10, 4  ;;  %s921_s11 = int_to_ptr.vmem [resolvable:$true] %s920_s11 }
  0x20   :  { %938 = vmatmul.mubr.msk.bf16.vlgmr.msra.gmra.mxu0 %vm99_vm1, %v984_v4  ;;  %286 = vmatpush1.bf16.msra.mxu1 %v1222_v17  ;;  %s1115_s12 = scalar_lea.vmem %s921_s11, 128  ;;  %p1120_p11 = scmp.lt.s32.totalorder %s921_s11, %s921_s11 }
  0x21   :  { %164 = vmatprep.mubr.bf16.mxu0 %v1143_v0  ;;  %430 = vmatpush1.bf16.msra.mxu0 %v1208_v15  ;;  %p1116_p10 = scmp.ne.s32.totalorder %s921_s11, %s1115_s12  ;;  %p1121_p12 = scmp.lt.s32.totalorder %s1115_s12, %s1115_s12 }
  0x22   :  { %431 = vmatprep.subr.bf16.mxu0 %v1217_v16  ;;  %287 = vmatprep.subr.bf16.mxu1 %v1231_v18 }
  0x23   :  { %p1122_p13 = por %p1121_p12, %p1120_p11 }
  0x24   :  { %288 = vmatpush1.bf16.msra.mxu1 %v1236_v20 }
  0x25   :  { %432 = vmatpush1.bf16.msra.mxu0 %v1222_v17  ;;  %289 = vmatprep.subr.bf16.mxu1 %v1245_v21  ;;  %p1123_p0 = pnand %p1122_p13, %p1116_p10 }
  0x26   :  { %433 = vmatprep.subr.bf16.mxu0 %v1231_v18 }
  0x28   :  { %290 = vmatpush1.bf16.msra.mxu1 %v1251_v22  ;;  %939 = vmatmul.mubr.msk.bf16.gmra.mxu0 %vm99_vm1, %v997_v58 }
  0x29   :  { %434 = vmatpush1.bf16.msra.mxu0 %v1236_v20  ;;  %358 = vmatprep.subr.bf16.mxu1 %v1203_v14 }
  0x2a   :  { %435 = vmatprep.subr.bf16.mxu0 %v1245_v21  ;;  %174 = vmatprep.mubr.bf16.mxu0 %v1143_v0 }
  0x2d   :  { %436 = vmatpush1.bf16.msra.mxu0 %v1251_v22 }
  0x2e   :  { %571 = vmatprep.subr.bf16.mxu0 %v1203_v14 }
  0xe0   :  { %v156_v11 = vpop.f32.mrf.mxu0 }
  0xe1   :  { %v157_v25 = vadd.f32 %v156_v11, %v1259_v24 }
  0xe2   :  { %v158_v12 = vpop.f32.mrf.mxu0 }
  0xe3   :  { %v159_v13 = vadd.f32 %v158_v12, %v1197_v10  ;;  %v211_v26 = vmul.f32 0.5, %v157_v25 }
  0xe4   :  { %v160_v41 = vpop.f32.mrf.mxu0 }
  0xe5   :  { %1003 = vtanh.f32 %v159_v13  ;;  %v221_v27 = vmul.f32 0.5, %v159_v13  ;;  %v161_v43 = vadd.f32 %v160_v41, %v1259_v24 }
  0xe6   :  { %1005 = vtanh.f32 %v211_v26  ;;  %v162_v42 = vpop.f32.mrf.mxu0 }
  0xe7   :  { %1007 = vtanh.f32 %v221_v27  ;;  %v163_v45 = vadd.f32 %v162_v42, %v1197_v10 }
  0xe8   :  { %v166_v8 = vpop.f32.mrf.mxu0 }
  0xe9   :  { %v167_v9 = vadd.f32 %v166_v8, %v1259_v24 }
  0xea   :  { %v168_v11 = vpop.f32.mrf.mxu0 }
  0xeb   :  { %v169_v13 = vadd.f32 %v168_v11, %v1197_v10 }
  0xec   :  { %v170_v42 = vpop.f32.mrf.mxu0 }
  0xf2   :  { %v1004_v19 = vpop.eup %1003 }
  0xf3   :  { %217 = vrot.lane.b32.xlu0 %v1004_v19, %s1144_s19  ;;  %v1006_v28 = vpop.eup %1005 }
  0xf4   :  { %v213_v29 = vmul.f32 0.5, %v1006_v28  ;;  %v1008_v34 = vpop.eup %1007 }
  0xf5   :  { %v223_v35 = vmul.f32 0.5, %v1008_v34 }
  0xf6   :  { %v214_v30 = vadd.f32 0.5, %v213_v29 }
  0xf7   :  { %v224_v36 = vadd.f32 0.5, %v223_v35  ;;  %v998_v35 = vld [vmem:[%s1429_s0 + $0x10] sm:$0xff]  }
  0xf8   :  { %940 = vmatmul.mubr.msk.bf16.gmra.mxu0 %vm99_vm1, %v998_v35 }
  0xf9   :  { %184 = vmatprep.mubr.bf16.mxu0 %v1143_v0 }
 0x165   :  { %v218_v31 = vpop.permute.xlu0 %217 }
 0x166   :  { %v220_v32 = vmul.f32 %v218_v31, %v214_v30 }
 0x168   :  { %1009 = vtanh.f32 %v220_v32  ;;  %v229_v33 = vsel %vm227_vm2, %v220_v32, 0.0 }
 0x169   :  { %326 = vrot.lane.b32.xlu1 %v229_v33, %s1144_s19 }
 0x175   :  { %v1010_v37 = vpop.eup %1009 }
 0x176   :  { %v226_v38 = vmul.f32 %v1010_v37, %v224_v36  ;;  %v999_v36 = vld [vmem:[%s1429_s0 + $0x18] sm:$0xff]   ;;  %v1000_v37 = vld [vmem:[%s1429_s0 + $0x20] ss:$0 sps:$4 sm:$0xff]  }
 0x177   :  { %941 = vmatmul.mubr.msk.bf16.gmra.mxu0 %vm99_vm1, %v999_v36 }
 0x178   :  { %v228_v39 = vsel %vm227_vm2, %v226_v38, 0.0  ;;  %194 = vmatprep.mubr.bf16.mxu0 %v1143_v0 }
 0x179   :  { %v230_v40 = vpack.c.bf16 %v228_v39, %v228_v39 }
 0x17b   :  { %951 = vmatmul.mubr.msk.bf16.vlgmr.msra.gmra.mxu1 %vm271_vm3, %v230_v40 }
 0x17c   :  { %359 = vmatpush1.bf16.msra.mxu1 %v1208_v15  ;;  %382 = vmatprep.mubr.bf16.mxu1 %v1143_v0 }
 0x17d   :  { %360 = vmatprep.subr.bf16.mxu1 %v1217_v16 }
 0x17f   :  { %942 = vmatmul.mubr.msk.bf16.gmra.mxu0 %vm99_vm1, %v1000_v37 }
 0x180   :  { %361 = vmatpush1.bf16.msra.mxu1 %v1222_v17  ;;  %453 = vmatprep.mubr.bf16.mxu0 %v1143_v0 }
 0x181   :  { %362 = vmatprep.subr.bf16.mxu1 %v1231_v18 }
 0x184   :  { %363 = vmatpush1.bf16.msra.mxu1 %v1236_v20 }
 0x185   :  { %364 = vmatprep.subr.bf16.mxu1 %v1245_v21 }
 0x188   :  { %365 = vmatpush1.bf16.msra.mxu1 %v1251_v22 }
 0x189   :  { %500 = vmatprep.subr.bf16.mxu1 %v1203_v14 }
 0x1db   :  { %v327_v59 = vpop.permute.xlu1 %326 }
 0x23b   :  { %v309_v44 = vpop.f32.mrf.mxu1 }
 0x23c   :  { %v310_v46 = vadd.f32 %v309_v44, %v161_v43  ;;  %v172_v43 = vpop.f32.mrf.mxu0 }
 0x23d   :  { %v311_v47 = vpop.f32.mrf.mxu1 }
 0x23e   :  { %v312_v48 = vadd.f32 %v311_v47, %v163_v45  ;;  %v316_v52 = vmul.f32 0.5, %v310_v46  ;;  %v1315_v44 = vpop.f32.mrf.mxu0 }
 0x23f   :  { %v313_v49 = vpop.f32.mrf.mxu1  ;;  %v177_v36 = vadd.f32 %v1315_v44, %v1259_v24 }
 0x240   :  { %1011 = vtanh.f32 %v312_v48  ;;  %v317_v1 = vmul.f32 0.5, %v312_v48  ;;  %v1317_v45 = vpop.f32.mrf.mxu0 }
 0x241   :  { %v314_v50 = vpop.f32.mrf.mxu1  ;;  %1013 = vtanh.f32 %v316_v52 }
 0x242   :  { %v1319_v46 = vpop.f32.mrf.mxu0 }
 0x244   :  { %v1321_v47 = vpop.f32.mrf.mxu0 }
 0x246   :  { %v1323_v48 = vpop.f32.mrf.mxu0 }
 0x248   :  { %v1325_v49 = vpop.f32.mrf.mxu0 }
 0x24a   :  { %v1327_v50 = vpop.f32.mrf.mxu0 }
 0x24d   :  { %v1012_v51 = vpop.eup %1011 }
 0x24e   :  { %331 = vrot.lane.b32.xlu0 %v1012_v51, %s1144_s19  ;;  %v1014_v53 = vpop.eup %1013  ;;  %v1329_v51 = vpop.f32.mrf.mxu0 }
 0x24f   :  { %v320_v54 = vmul.f32 0.5, %v1014_v53 }
 0x250   :  { %v1331_v52 = vpop.f32.mrf.mxu0 }
 0x251   :  { %v322_v55 = vadd.f32 0.5, %v320_v54 }
 0x252   :  { %v1333_v53 = vpop.f32.mrf.mxu0 }
 0x253   :  { %v329_v60 = vmul.f32 %v327_v59, %v322_v55 }
 0x254   :  { %v200_v54 = vpop.f32.mrf.mxu0 }
 0x2c0   :  { %v332_v56 = vpop.permute.xlu0 %331 }
 0x2c1   :  { %v334_v57 = vmul.f32 %v332_v56, %v322_v55  ;;  %v201_v55 = vpop.f32.mrf.mxu0 }
 0x2c3   :  { %336 = vrot.lane.b32.xlu1 %v334_v57, %s1144_s19 }
 0x335   :  { %v337_v61 = vpop.permute.xlu1 %336 }
 0x336   :  { %v339_v62 = vadd.f32 %v337_v61, %v329_v60 }
 0x338   :  { %1015 = vtanh.f32 %v339_v62 }
 0x339   :  { %1017 = vtanh.f32 %v317_v1 }
 0x345   :  { %v1016_v63 = vpop.eup %1015 }
 0x346   :  { %342 = vrot.lane.b32.xlu0 %v1016_v63, %s1144_s19  ;;  %v1018_v2 = vpop.eup %1017  ;;  %v171_v63 = vadd.f32 %v170_v42, %v1259_v24 }
 0x347   :  { %v321_v3 = vmul.f32 0.5, %v1018_v2  ;;  %v173_v2 = vadd.f32 %v172_v43, %v1197_v10 }
 0x349   :  { %v323_v4 = vadd.f32 0.5, %v321_v3 }
 0x3b8   :  { %v343_v5 = vpop.permute.xlu0 %342 }
 0x3b9   :  { %v345_v6 = vmul.f32 %v343_v5, %v323_v4 }
 0x3bb   :  { %v346_v7 = vpack.c.bf16 %v345_v6, %v345_v6 }
 0x3bd   :  { %952 = vmatmul.mubr.msk.bf16.vlgmr.msra.gmra.mxu1 %vm271_vm3, %v346_v7 }
 0x3be   :  { %501 = vmatpush1.bf16.msra.mxu1 %v1208_v15  ;;  %524 = vmatprep.mubr.bf16.mxu1 %v1143_v0 }
 0x3bf   :  { %502 = vmatprep.subr.bf16.mxu1 %v1217_v16 }
 0x3c2   :  { %503 = vmatpush1.bf16.msra.mxu1 %v1222_v17 }
 0x3c3   :  { %504 = vmatprep.subr.bf16.mxu1 %v1231_v18 }
 0x3c6   :  { %505 = vmatpush1.bf16.msra.mxu1 %v1236_v20 }
 0x3c7   :  { %506 = vmatprep.subr.bf16.mxu1 %v1245_v21 }
 0x3ca   :  { %507 = vmatpush1.bf16.msra.mxu1 %v1251_v22 }
 0x3cb   :  { %642 = vmatprep.subr.bf16.mxu1 %v1203_v14 }
 0x47d   :  { %v384_v12 = vpop.f32.mrf.mxu1 }
 0x47e   :  { %v385_v19 = vadd.f32 %v384_v12, %v167_v9 }
 0x47f   :  { %v386_v23 = vpop.f32.mrf.mxu1 }
 0x480   :  { %v387_v25 = vadd.f32 %v386_v23, %v169_v13  ;;  %v391_v29 = vmul.f32 0.5, %v385_v19 }
 0x481   :  { %v388_v26 = vpop.f32.mrf.mxu1 }
 0x482   :  { %1019 = vtanh.f32 %v387_v25  ;;  %v392_v56 = vmul.f32 0.5, %v387_v25 }
 0x483   :  { %v389_v27 = vpop.f32.mrf.mxu1  ;;  %1021 = vtanh.f32 %v391_v29 }
 0x48f   :  { %v1020_v28 = vpop.eup %1019 }
 0x490   :  { %402 = vrot.lane.b32.xlu1 %v1020_v28, %s1144_s19  ;;  %v1022_v30 = vpop.eup %1021 }
 0x491   :  { %v395_v31 = vmul.f32 0.5, %v1022_v30 }
 0x493   :  { %v397_v32 = vadd.f32 0.5, %v395_v31 }
 0x495   :  { %v400_v38 = vmul.f32 %v397_v32, %v339_v62 }
 0x502   :  { %v403_v33 = vpop.permute.xlu1 %402 }
 0x503   :  { %v405_v34 = vmul.f32 %v403_v33, %v397_v32 }
 0x505   :  { %407 = vrot.lane.b32.xlu0 %v405_v34, %s1144_s19 }
 0x577   :  { %v408_v39 = vpop.permute.xlu0 %407 }
 0x578   :  { %v410_v40 = vadd.f32 %v408_v39, %v400_v38  ;;  %v179_v38 = vadd.f32 %v1317_v45, %v1197_v10 }
 0x57a   :  { %1023 = vtanh.f32 %v410_v40 }
 0x57b   :  { %1025 = vtanh.f32 %v392_v56 }
 0x587   :  { %v1024_v41 = vpop.eup %1023 }
 0x588   :  { %413 = vrot.lane.b32.xlu1 %v1024_v41, %s1144_s19  ;;  %v1026_v57 = vpop.eup %1025 }
 0x589   :  { %v396_v58 = vmul.f32 0.5, %v1026_v57 }
 0x58b   :  { %v398_v59 = vadd.f32 0.5, %v396_v58 }
 0x5fa   :  { %v414_v60 = vpop.permute.xlu1 %413 }
 0x5fb   :  { %v416_v61 = vmul.f32 %v414_v60, %v398_v59 }
 0x5fd   :  { %v417_v62 = vpack.c.bf16 %v416_v61, %v416_v61 }
 0x5ff   :  { %953 = vmatmul.mubr.msk.bf16.vlgmr.msra.gmra.mxu0 %vm271_vm3, %v417_v62 }
 0x600   :  { %572 = vmatpush1.bf16.msra.mxu0 %v1208_v15  ;;  %595 = vmatprep.mubr.bf16.mxu0 %v1143_v0 }
 0x601   :  { %573 = vmatprep.subr.bf16.mxu0 %v1217_v16 }
 0x604   :  { %574 = vmatpush1.bf16.msra.mxu0 %v1222_v17 }
 0x605   :  { %575 = vmatprep.subr.bf16.mxu0 %v1231_v18 }
 0x608   :  { %576 = vmatpush1.bf16.msra.mxu0 %v1236_v20 }
 0x609   :  { %577 = vmatprep.subr.bf16.mxu0 %v1245_v21 }
 0x60c   :  { %578 = vmatpush1.bf16.msra.mxu0 %v1251_v22 }
 0x60d   :  { %713 = vmatprep.subr.bf16.mxu0 %v1203_v14 }
 0x6bf   :  { %v455_v1 = vpop.f32.mrf.mxu0 }
 0x6c0   :  { %v456_v3 = vadd.f32 %v455_v1, %v171_v63 }
 0x6c1   :  { %v457_v4 = vpop.f32.mrf.mxu0 }
 0x6c2   :  { %v458_v5 = vadd.f32 %v457_v4, %v173_v2  ;;  %v462_v9 = vmul.f32 0.5, %v456_v3 }
 0x6c3   :  { %v459_v6 = vpop.f32.mrf.mxu0 }
 0x6c4   :  { %1027 = vtanh.f32 %v458_v5  ;;  %v463_v29 = vmul.f32 0.5, %v458_v5  ;;  %v181_v6 = vadd.f32 %v1319_v46, %v1259_v24 }
 0x6c5   :  { %v460_v7 = vpop.f32.mrf.mxu0  ;;  %1029 = vtanh.f32 %v462_v9 }
 0x6d1   :  { %v1028_v8 = vpop.eup %1027 }
 0x6d2   :  { %473 = vrot.lane.b32.xlu0 %v1028_v8, %s1144_s19  ;;  %v1030_v11 = vpop.eup %1029  ;;  %v183_v8 = vadd.f32 %v1321_v47, %v1197_v10 }
 0x6d3   :  { %v466_v12 = vmul.f32 0.5, %v1030_v11 }
 0x6d5   :  { %v468_v13 = vadd.f32 0.5, %v466_v12 }
 0x6d7   :  { %v471_v25 = vmul.f32 %v468_v13, %v410_v40 }
 0x744   :  { %v474_v19 = vpop.permute.xlu0 %473 }
 0x745   :  { %v476_v23 = vmul.f32 %v474_v19, %v468_v13 }
 0x747   :  { %478 = vrot.lane.b32.xlu1 %v476_v23, %s1144_s19 }
 0x7b9   :  { %v479_v26 = vpop.permute.xlu1 %478 }
 0x7ba   :  { %v481_v27 = vadd.f32 %v479_v26, %v471_v25 }
 0x7bc   :  { %1031 = vtanh.f32 %v481_v27 }
 0x7bd   :  { %1033 = vtanh.f32 %v463_v29 }
 0x7c9   :  { %v1032_v28 = vpop.eup %1031 }
 0x7ca   :  { %484 = vrot.lane.b32.xlu0 %v1032_v28, %s1144_s19  ;;  %v1034_v30 = vpop.eup %1033 }
 0x7cb   :  { %v467_v31 = vmul.f32 0.5, %v1034_v30 }
 0x7cd   :  { %v469_v32 = vadd.f32 0.5, %v467_v31 }
 0x83c   :  { %v485_v33 = vpop.permute.xlu0 %484 }
 0x83d   :  { %v487_v34 = vmul.f32 %v485_v33, %v469_v32 }
 0x83f   :  { %v488_v35 = vpack.c.bf16 %v487_v34, %v487_v34 }
 0x841   :  { %954 = vmatmul.mubr.msk.bf16.vlgmr.msra.gmra.mxu1 %vm271_vm3, %v488_v35 }
 0x842   :  { %643 = vmatpush1.bf16.msra.mxu1 %v1208_v15  ;;  %666 = vmatprep.mubr.bf16.mxu1 %v1143_v0 }
 0x843   :  { %644 = vmatprep.subr.bf16.mxu1 %v1217_v16 }
 0x846   :  { %645 = vmatpush1.bf16.msra.mxu1 %v1222_v17 }
 0x847   :  { %646 = vmatprep.subr.bf16.mxu1 %v1231_v18 }
 0x84a   :  { %647 = vmatpush1.bf16.msra.mxu1 %v1236_v20 }
 0x84b   :  { %648 = vmatprep.subr.bf16.mxu1 %v1245_v21 }
 0x84e   :  { %649 = vmatpush1.bf16.msra.mxu1 %v1251_v22 }
 0x84f   :  { %784 = vmatprep.subr.bf16.mxu1 %v1203_v14 }
 0x901   :  { %v526_v37 = vpop.f32.mrf.mxu1 }
 0x902   :  { %v527_v39 = vadd.f32 %v526_v37, %v177_v36 }
 0x903   :  { %v528_v40 = vpop.f32.mrf.mxu1 }
 0x904   :  { %v529_v41 = vadd.f32 %v528_v40, %v179_v38  ;;  %v533_v55 = vmul.f32 0.5, %v527_v39  ;;  %v187_v40 = vadd.f32 %v1323_v48, %v1259_v24 }
 0x905   :  { %v530_v42 = vpop.f32.mrf.mxu1 }
 0x906   :  { %1035 = vtanh.f32 %v529_v41  ;;  %v534_v62 = vmul.f32 0.5, %v529_v41 }
 0x907   :  { %v531_v43 = vpop.f32.mrf.mxu1  ;;  %1037 = vtanh.f32 %v533_v55 }
 0x913   :  { %v1036_v54 = vpop.eup %1035 }
 0x914   :  { %544 = vrot.lane.b32.xlu1 %v1036_v54, %s1144_s19  ;;  %v1038_v56 = vpop.eup %1037 }
 0x915   :  { %v537_v14 = vmul.f32 0.5, %v1038_v56 }
 0x917   :  { %v539_v57 = vadd.f32 0.5, %v537_v14 }
 0x919   :  { %v542_v59 = vmul.f32 %v539_v57, %v481_v27 }
 0x986   :  { %v545_v58 = vpop.permute.xlu1 %544 }
 0x987   :  { %v547_v44 = vmul.f32 %v545_v58, %v539_v57 }
 0x989   :  { %549 = vrot.lane.b32.xlu0 %v547_v44, %s1144_s19 }
 0x9fb   :  { %v550_v45 = vpop.permute.xlu0 %549 }
 0x9fc   :  { %v552_v60 = vadd.f32 %v550_v45, %v542_v59 }
 0x9fe   :  { %1039 = vtanh.f32 %v552_v60 }
 0x9ff   :  { %1041 = vtanh.f32 %v534_v62 }
 0xa0b   :  { %v1040_v61 = vpop.eup %1039 }
 0xa0c   :  { %555 = vrot.lane.b32.xlu1 %v1040_v61, %s1144_s19  ;;  %v1042_v63 = vpop.eup %1041 }
 0xa0d   :  { %v538_v1 = vmul.f32 0.5, %v1042_v63  ;;  %v191_v63 = vadd.f32 %v1327_v50, %v1259_v24 }
 0xa0f   :  { %v540_v2 = vadd.f32 0.5, %v538_v1 }
 0xa7e   :  { %v556_v3 = vpop.permute.xlu1 %555 }
 0xa7f   :  { %v558_v4 = vmul.f32 %v556_v3, %v540_v2  ;;  %v193_v2 = vadd.f32 %v1329_v51, %v1197_v10 }
 0xa81   :  { %v559_v5 = vpack.c.bf16 %v558_v4, %v558_v4 }
 0xa83   :  { %955 = vmatmul.mubr.msk.bf16.vlgmr.msra.gmra.mxu0 %vm271_vm3, %v559_v5 }
 0xa84   :  { %714 = vmatpush1.bf16.msra.mxu0 %v1208_v15  ;;  %737 = vmatprep.mubr.bf16.mxu0 %v1143_v0 }
 0xa85   :  { %715 = vmatprep.subr.bf16.mxu0 %v1217_v16 }
 0xa88   :  { %716 = vmatpush1.bf16.msra.mxu0 %v1222_v17 }
 0xa89   :  { %717 = vmatprep.subr.bf16.mxu0 %v1231_v18 }
 0xa8c   :  { %718 = vmatpush1.bf16.msra.mxu0 %v1236_v20 }
 0xa8d   :  { %719 = vmatprep.subr.bf16.mxu0 %v1245_v21 }
 0xa90   :  { %720 = vmatpush1.bf16.msra.mxu0 %v1251_v22 }
 0xb43   :  { %v597_v7 = vpop.f32.mrf.mxu0 }
 0xb44   :  { %v598_v9 = vadd.f32 %v597_v7, %v181_v6 }
 0xb45   :  { %v599_v11 = vpop.f32.mrf.mxu0 }
 0xb46   :  { %v600_v12 = vadd.f32 %v599_v11, %v183_v8  ;;  %v604_v25 = vmul.f32 0.5, %v598_v9 }
 0xb47   :  { %v601_v13 = vpop.f32.mrf.mxu0 }
 0xb48   :  { %1043 = vtanh.f32 %v600_v12  ;;  %v605_v33 = vmul.f32 0.5, %v600_v12 }
 0xb49   :  { %v602_v19 = vpop.f32.mrf.mxu0  ;;  %1045 = vtanh.f32 %v604_v25 }
 0xb55   :  { %v1044_v23 = vpop.eup %1043 }
 0xb56   :  { %615 = vrot.lane.b32.xlu0 %v1044_v23, %s1144_s19  ;;  %v1046_v26 = vpop.eup %1045 }
 0xb57   :  { %v608_v27 = vmul.f32 0.5, %v1046_v26 }
 0xb59   :  { %v610_v28 = vadd.f32 0.5, %v608_v27 }
 0xb5b   :  { %v613_v30 = vmul.f32 %v610_v28, %v552_v60 }
 0xbc8   :  { %v616_v29 = vpop.permute.xlu0 %615 }
 0xbc9   :  { %v618_v46 = vmul.f32 %v616_v29, %v610_v28 }
 0xbcb   :  { %620 = vrot.lane.b32.xlu1 %v618_v46, %s1144_s19 }
 0xc3d   :  { %v621_v47 = vpop.permute.xlu1 %620 }
 0xc3e   :  { %v623_v31 = vadd.f32 %v621_v47, %v613_v30 }
 0xc40   :  { %1047 = vtanh.f32 %v623_v31 }
 0xc41   :  { %1049 = vtanh.f32 %v605_v33 }
 0xc4d   :  { %v1048_v32 = vpop.eup %1047 }
 0xc4e   :  { %626 = vrot.lane.b32.xlu0 %v1048_v32, %s1144_s19  ;;  %v1050_v34 = vpop.eup %1049  ;;  %v197_v32 = vadd.f32 %v1331_v52, %v1259_v24 }
 0xc4f   :  { %v609_v35 = vmul.f32 0.5, %v1050_v34  ;;  %v199_v34 = vadd.f32 %v1333_v53, %v1197_v10 }
 0xc51   :  { %v611_v36 = vadd.f32 0.5, %v609_v35 }
 0xcc0   :  { %v627_v37 = vpop.permute.xlu0 %626 }
 0xcc1   :  { %v629_v38 = vmul.f32 %v627_v37, %v611_v36 }
 0xcc3   :  { %v630_v39 = vpack.c.bf16 %v629_v38, %v629_v38 }
 0xcc5   :  { %956 = vmatmul.mubr.msk.bf16.vlgmr.msra.gmra.mxu1 %vm271_vm3, %v630_v39 }
 0xcc6   :  { %785 = vmatpush1.bf16.msra.mxu1 %v1208_v15  ;;  %808 = vmatprep.mubr.bf16.mxu1 %v1143_v0  ;;  %v189_v15 = vadd.f32 %v1325_v49, %v1197_v10 }
 0xcc7   :  { %786 = vmatprep.subr.bf16.mxu1 %v1217_v16 }
 0xcca   :  { %787 = vmatpush1.bf16.msra.mxu1 %v1222_v17 }
 0xccb   :  { %788 = vmatprep.subr.bf16.mxu1 %v1231_v18 }
 0xcce   :  { %789 = vmatpush1.bf16.msra.mxu1 %v1236_v20 }
 0xccf   :  { %790 = vmatprep.subr.bf16.mxu1 %v1245_v21 }
 0xcd2   :  { %791 = vmatpush1.bf16.msra.mxu1 %v1251_v22 }
 0xd85   :  { %v668_v41 = vpop.f32.mrf.mxu1 }
 0xd86   :  { %v669_v0 = vadd.f32 %v668_v41, %v187_v40 }
 0xd87   :  { %v670_v42 = vpop.f32.mrf.mxu1 }
 0xd88   :  { %v671_v16 = vadd.f32 %v670_v42, %v189_v15  ;;  %v675_v20 = vmul.f32 0.5, %v669_v0 }
 0xd89   :  { %v672_v43 = vpop.f32.mrf.mxu1 }
 0xd8a   :  { %1051 = vtanh.f32 %v671_v16  ;;  %v676_v58 = vmul.f32 0.5, %v671_v16  ;;  %v1001_v43 = vld [vmem:[%s1433_s4 + $0x8] sm:$0xff]  }
 0xd8b   :  { %v673_v17 = vpop.f32.mrf.mxu1  ;;  %1053 = vtanh.f32 %v675_v20 }
 0xd8c   :  { %v1145_v17 = vmov 0.0  }
 0xd8d   :  { %966 = vmatprep.subr.bf16.mxu0 %v1145_v17 }
 0xd97   :  { %v1052_v18 = vpop.eup %1051 }
 0xd98   :  { %686 = vrot.lane.b32.xlu1 %v1052_v18, %s1144_s19  ;;  %v1054_v21 = vpop.eup %1053  ;;  %v1002_v18 = vld [vmem:[%s1433_s4] sm:$0xff]  }
 0xd99   :  { %v679_v22 = vmul.f32 0.5, %v1054_v21 }
 0xd9b   :  { %v681_v54 = vadd.f32 0.5, %v679_v22 }
 0xd9d   :  { %v684_v56 = vmul.f32 %v681_v54, %v623_v31 }
 0xe0a   :  { %v687_v55 = vpop.permute.xlu1 %686 }
 0xe0b   :  { %v689_v48 = vmul.f32 %v687_v55, %v681_v54 }
 0xe0d   :  { %691 = vrot.lane.b32.xlu0 %v689_v48, %s1144_s19 }
 0xe7f   :  { %v692_v49 = vpop.permute.xlu0 %691 }
 0xe80   :  { %v694_v14 = vadd.f32 %v692_v49, %v684_v56 }
 0xe82   :  { %1055 = vtanh.f32 %v694_v14 }
 0xe83   :  { %1057 = vtanh.f32 %v676_v58 }
 0xe8f   :  { %v1056_v57 = vpop.eup %1055 }
 0xe90   :  { %697 = vrot.lane.b32.xlu1 %v1056_v57, %s1144_s19  ;;  %v1058_v44 = vpop.eup %1057  ;;  %v959_v57 = vld [vmem:[%s1434_s5] ss:$0 sm:$0xff] }
 0xe91   :  { %v680_v59 = vmul.f32 0.5, %v1058_v44 }
 0xe93   :  { %v682_v45 = vadd.f32 0.5, %v680_v59 }
 0xf02   :  { %v698_v60 = vpop.permute.xlu1 %697 }
 0xf03   :  { %v700_v61 = vmul.f32 %v698_v60, %v682_v45 }
 0xf05   :  { %v701_v62 = vpack.c.bf16 %v700_v61, %v700_v61 }
 0xf07   :  { %957 = vmatmul.mubr.msk.bf16.vlgmr.msra.gmra.mxu0 %vm271_vm3, %v701_v62 }
 0xf08   :  { %970 = vmatprep.mubr.msk.bf16.mxu0 %vm1146_vm4, %v1145_v17  ;;  %967 = vmatpush3.bf16.msra.mxu0 %v1001_v43 }
 0xf09   :  { %968 = vmatprep.subr.bf16.mxu0 %v1145_v17 }
 0xf0c   :  { %969 = vmatpush3.bf16.msra.mxu0 %v1002_v18 }
 0xfc7   :  { %v739_v1 = vpop.f32.mrf.mxu0 }
 0xfc8   :  { %v740_v3 = vadd.f32 %v739_v1, %v191_v63 }
 0xfc9   :  { %v741_v4 = vpop.f32.mrf.mxu0 }
 0xfca   :  { %v742_v5 = vadd.f32 %v741_v4, %v193_v2  ;;  %v746_v9 = vmul.f32 0.5, %v740_v3 }
 0xfcb   :  { %v743_v6 = vpop.f32.mrf.mxu0 }
 0xfcc   :  { %1059 = vtanh.f32 %v742_v5  ;;  %v747_v27 = vmul.f32 0.5, %v742_v5 }
 0xfcd   :  { %v744_v7 = vpop.f32.mrf.mxu0  ;;  %1061 = vtanh.f32 %v746_v9 }
 0xfd9   :  { %v1060_v8 = vpop.eup %1059 }
 0xfda   :  { %757 = vrot.lane.b32.xlu0 %v1060_v8, %s1144_s19  ;;  %v1062_v11 = vpop.eup %1061 }
 0xfdb   :  { %v750_v12 = vmul.f32 0.5, %v1062_v11 }
 0xfdd   :  { %v752_v13 = vadd.f32 0.5, %v750_v12 }
 0xfdf   :  { %v755_v23 = vmul.f32 %v752_v13, %v694_v14 }
0x104c   :  { %v758_v19 = vpop.permute.xlu0 %757 }
0x104d   :  { %v760_v50 = vmul.f32 %v758_v19, %v752_v13 }
0x104f   :  { %762 = vrot.lane.b32.xlu1 %v760_v50, %s1144_s19 }
0x10c1   :  { %v763_v51 = vpop.permute.xlu1 %762 }
0x10c2   :  { %v765_v25 = vadd.f32 %v763_v51, %v755_v23 }
0x10c4   :  { %1063 = vtanh.f32 %v765_v25 }
0x10c5   :  { %1065 = vtanh.f32 %v747_v27 }
0x10d1   :  { %v1064_v26 = vpop.eup %1063 }
0x10d2   :  { %768 = vrot.lane.b32.xlu0 %v1064_v26, %s1144_s19  ;;  %v1066_v28 = vpop.eup %1065 }
0x10d3   :  { %v751_v29 = vmul.f32 0.5, %v1066_v28 }
0x10d5   :  { %v753_v46 = vadd.f32 0.5, %v751_v29 }
0x1144   :  { %v769_v30 = vpop.permute.xlu0 %768 }
0x1145   :  { %v771_v47 = vmul.f32 %v769_v30, %v753_v46 }
0x1147   :  { %v772_v31 = vpack.c.bf16 %v771_v47, %v771_v47 }
0x1149   :  { %958 = vmatmul.mubr.msk.bf16.vlgmr.msra.gmra.mxu1 %vm271_vm3, %v772_v31 }
0x1209   :  { %v810_v33 = vpop.f32.mrf.mxu1 }
0x120a   :  { %v811_v35 = vadd.f32 %v810_v33, %v197_v32 }
0x120b   :  { %v812_v36 = vpop.f32.mrf.mxu1 }
0x120c   :  { %v813_v37 = vadd.f32 %v812_v36, %v199_v34  ;;  %v817_v41 = vmul.f32 0.5, %v811_v35 }
0x120d   :  { %v814_v38 = vpop.f32.mrf.mxu1 }
0x120e   :  { %1067 = vtanh.f32 %v813_v37  ;;  %v818_v21 = vmul.f32 0.5, %v813_v37 }
0x120f   :  { %v815_v39 = vpop.f32.mrf.mxu1  ;;  %1069 = vtanh.f32 %v817_v41 }
0x121b   :  { %v1068_v40 = vpop.eup %1067 }
0x121c   :  { %828 = vrot.lane.b32.xlu1 %v1068_v40, %s1144_s19  ;;  %v1070_v15 = vpop.eup %1069 }
0x121d   :  { %v821_v0 = vmul.f32 0.5, %v1070_v15 }
0x121f   :  { %v823_v42 = vadd.f32 0.5, %v821_v0 }
0x1221   :  { %v826_v52 = vmul.f32 %v823_v42, %v765_v25 }
0x128e   :  { %v829_v16 = vpop.permute.xlu1 %828 }
0x128f   :  { %v831_v24 = vmul.f32 %v829_v16, %v823_v42 }
0x1291   :  { %833 = vrot.lane.b32.xlu0 %v831_v24, %s1144_s19 }
0x1303   :  { %v834_v10 = vpop.permute.xlu0 %833 }
0x1304   :  { %v836_v53 = vadd.f32 %v834_v10, %v826_v52 }
0x1306   :  { %1071 = vtanh.f32 %v836_v53 }
0x1307   :  { %1073 = vtanh.f32 %v818_v21 }
0x1313   :  { %v1072_v20 = vpop.eup %1071 }
0x1314   :  { %839 = vrot.lane.b32.xlu1 %v1072_v20, %s1144_s19  ;;  %v1074_v22 = vpop.eup %1073 }
0x1315   :  { %v822_v54 = vmul.f32 0.5, %v1074_v22 }
0x1317   :  { %v824_v55 = vadd.f32 0.5, %v822_v54 }
0x1386   :  { %v840_v48 = vpop.permute.xlu1 %839 }
0x1387   :  { %v842_v56 = vmul.f32 %v840_v48, %v824_v55 }
0x1389   :  { %v843_v49 = vpack.c.bf16 %v842_v56, %v842_v56 }
0x138b   :  { %856 = vrot.lane.b32.xlu0 %v843_v49, %s1147_s8 }
0x13fd   :  { %v857_v14 = vpop.permute.xlu0 %856 }
0x13fe   :  { %971 = vmatmul.mubr.msk.bf16.vlgmr.msra.gmra.mxu0 %vm227_vm2, %v857_v14 }
0x14be   :  { %v907_v58 = vpop.f32.mrf.mxu0 }
0x14bf   :  { %v908_v44 = vadd.f32 %v959_v57, %v907_v58 }
0x14c0   :  { %v972_v59 = vpop.f32.mrf.mxu0 }
0x14c1   :  { %913 = vst.msk [vmem:[#allocation7] sm:$0xff] %vm99_vm1, %v908_v44 }
0x14c2   :  { %v910_v45 = vpop.f32.mrf.mxu0 }
0x14c3   :  { %1126 = shalt.err (!%p1123_p0)
}
0x14c4   :  { %923 = dma.vmem_to_hbm [thread:$0]  %s921_s11, 128, %s1435_s6, [#allocation4]   ;;  %v973_v60 = vpop.f32.mrf.mxu0 }
0x14c5   :  { %1139 = dma.done.wait [#allocation4], 128  }
0x14c6   :  { %1140 = vsyncadd [#allocation4], 4294967168 }
0x14c7   :  { %927 = vsyncpa [#allocation3], 1 }
0x14c8   :  { %928 = vsyncpa [#allocation6], 1 }
0x14c9   :  { %929 = vsyncpa [#allocation4], 1 }

</bundles_post_ra>
